<compile_context>
chip_gen: v7x
topology: tpu7x:2x2x1
jax: 0.10.0
libtpu: 0.0.40
codegen_flags: <defaults>
</compile_context>

<pallas_src>
import functools
import inspect

import jax
import jax.numpy as jnp
from jax import lax
from jax.experimental import pallas as pl
from jax.experimental.pallas import tpu as pltpu


# -----------------------------------------------------------------------------
# Small helpers
# -----------------------------------------------------------------------------
def _round_up(x, m):
    return (x + m - 1) // m * m


def _cdiv(a, b):
    return -(-a // b)


def _buffered(n):
    """pl.Buffered across builds (positional vs keyword-only)."""
    try:
        return pl.Buffered(n)
    except TypeError:
        return pl.Buffered(buffer_count=n)


_BUFFERED_ONE_SUPPORTED = None


def _buffered_one_ok():
    """Feature-detect BlockSpec(pipeline_mode=pl.Buffered(1)) with one tiny
    probe compile.  The broad except is confined to this probe; real-kernel
    compile errors are never masked."""
    global _BUFFERED_ONE_SUPPORTED
    if _BUFFERED_ONE_SUPPORTED is not None:
        return _BUFFERED_ONE_SUPPORTED
    ok = False
    try:
        if hasattr(pl, "Buffered") and (
                "pipeline_mode" in inspect.signature(pl.BlockSpec).parameters):
            def probe(x_ref, w_ref, o_ref):
                o_ref[...] = x_ref[...] + w_ref[...]

            fn = pl.pallas_call(
                probe,
                out_shape=jax.ShapeDtypeStruct((16, 128), jnp.float32),
                grid_spec=pltpu.PrefetchScalarGridSpec(
                    num_scalar_prefetch=0, grid=(2,),
                    in_specs=[
                        pl.BlockSpec((8, 128), lambda i: (i, 0)),
                        pl.BlockSpec((8, 128), lambda i: (0, 0),
                                     pipeline_mode=_buffered(1)),
                    ],
                    out_specs=pl.BlockSpec((8, 128), lambda i: (i, 0))))
            jax.block_until_ready(fn(jnp.zeros((16, 128), jnp.float32),
                                     jnp.zeros((8, 128), jnp.float32)))
            ok = True
    except Exception:  # probe only: fall back to default double buffering
        ok = False
    _BUFFERED_ONE_SUPPORTED = ok
    return ok


def _tpu_vmem_capacity():
    """Per-TensorCore VMEM capacity; conservative 64 MiB (v7x) fallback."""
    try:
        info = pltpu.get_tpu_info()
    except Exception:
        return 64 * 2 ** 20
    for name in ("vmem_capacity_bytes", "vmem_bytes", "vmem_size_bytes"):
        v = getattr(info, name, None)
        if v:
            return int(v)
    return 64 * 2 ** 20


# -----------------------------------------------------------------------------
# Kernel
# -----------------------------------------------------------------------------
def classifier_kernel(x_ref, w1_ref, b1_ref, w2_ref, b2_ref,
                      logits_ref, logprob_ref, *, n_valid_out, approx_gate):
    """One (tm, D) row tile -> (tm, o_pad) logits + log-softmax tiles."""
    # In-kernel cast to the weight dtype: keeps the HBM read of x at its
    # stored width and avoids a separate wrapper-side astype pass over x.
    x = x_ref[...].astype(w1_ref.dtype)

    # linear1 (f32 accumulation on the MXU)
    h = jnp.dot(x, w1_ref[...], preferred_element_type=jnp.float32) + b1_ref[...]

    # dropout(p=0.2): identity in eval/inference mode.
    # TODO(synk): training-mode dropout (pltpu.prng_* mask) not implemented.

    # mish gate  h * tanh(softplus(h))  via the algebraic identity
    #   tanh(log1p(e)) = ((1+e)^2 - 1) / ((1+e)^2 + 1),   e = exp(h)
    # -> 1 EUP exp (+1 approx reciprocal in the bf16 path).  Clamp the exp
    # argument: for h > 20 the gate is 1 to f32 precision and (1+e)^2 stays
    # far below the f32 overflow threshold.
    e = jnp.exp(jnp.minimum(h, 20.0))
    t = (1.0 + e) * (1.0 + e)
    if approx_gate:
        # memory-bound bf16 path: EUP approx reciprocal is effectively free
        h = h * (t - 1.0) * pl.reciprocal(t + 1.0, approx=True)
    else:
        # MXU-bound f32 path: exact division; the extra VPU work is free slack
        h = h * (t - 1.0) / (t + 1.0)

    # linear2 (cast the gate output to the weight dtype so bf16 uses the
    # native MXU path; no-op when everything is f32)
    logits = jnp.dot(h.astype(w2_ref.dtype), w2_ref[...],
                     preferred_element_type=jnp.float32) + b2_ref[...]
    logits_ref[...] = logits.astype(logits_ref.dtype)

    # log-softmax over the feature axis (== torch.LogSoftmax(dim=2)), computed
    # in f32 on the full-precision logits.  Padded output lanes (zero
    # weight/bias columns) are excluded when lane padding is in use.
    if n_valid_out != logits.shape[-1]:
        lane = lax.broadcasted_iota(jnp.int32, logits.shape, 1)
        logits = jnp.where(lane < n_valid_out, logits, -1e30)
    m = jnp.max(logits, axis=-1, keepdims=True)
    shifted = logits - m
    lse = jnp.log(jnp.sum(jnp.exp(shifted), axis=-1, keepdims=True))
    logprob_ref[...] = (shifted - lse).astype(logprob_ref.dtype)


# -----------------------------------------------------------------------------
# Tiling helpers
# -----------------------------------------------------------------------------
_ROW_ALIGN = 16  # sublane multiple that is safe for f32 and bf16 tiles


def _vmem_bytes(tm, d, o_pad, weight_bufs, x_bytes, w_bytes, out_bytes):
    """Approximate VMEM footprint of the pipelined buffers."""
    x_tile = 2 * tm * d * x_bytes                 # input rows, double-buffered
    outs = 2 * 2 * tm * o_pad * out_bytes         # two outputs, double-buffered
    weights = weight_bufs * (d * d + d * o_pad) * w_bytes
    biases = weight_bufs * (d + o_pad) * 4
    return x_tile + outs + weights + biases


def _choose_tm(m, d, o_pad, *, budget, tm_cap, x_bytes, w_bytes, out_bytes):
    """Row tile: big enough to amortize the ~0.35us/grid-step overhead, small
    enough for the per-generation VMEM budget, and >= 2 (even) grid steps once
    M is big so both v7x TensorCores get work."""
    m_al = _round_up(max(m, 1), _ROW_ALIGN)
    if m_al <= 512:
        tm = m_al                                   # single step, tiny problem
    elif m_al <= 2 * tm_cap:
        # exactly 2 steps -> both TCs busy on v7x, one extra step elsewhere
        tm = max(256, _round_up(_cdiv(m_al, 2), _ROW_ALIGN))
    else:
        steps = _cdiv(m_al, tm_cap)
        if steps % 2:
            steps += 1                              # even step count for 2 TCs
        tm = max(256, _round_up(_cdiv(m_al, steps), _ROW_ALIGN))
    # shrink until the (conservatively double-buffered) working set fits VMEM
    while tm > 64 and _vmem_bytes(tm, d, o_pad, 2,
                                  x_bytes, w_bytes, out_bytes) > budget:
        tm = max(64, _round_up(tm // 2, _ROW_ALIGN))
    return tm


# -----------------------------------------------------------------------------
# Forward wrapper
# -----------------------------------------------------------------------------
@functools.partial(
    jax.jit,
    static_argnames=("tm", "o_pad", "compute_dtype", "out_dtype",
                     "single_buffer_weights", "vmem_limit"))
def _forward_impl(x, w1, b1, w2, b2, *, tm, o_pad, compute_dtype, out_dtype,
                  single_buffer_weights, vmem_limit):
    B, S, D = x.shape
    O = w2.shape[-1]
    M = B * S

    # Flatten rows only (free layout change).  No row padding and no astype on
    # x: the last (partial) row block is handled by Pallas' clipped DMA +
    # masked writeback, and the compute-dtype cast happens inside the kernel.
    x2d = x.reshape(M, D)
    w1c = w1.astype(compute_dtype)
    w2c = w2.astype(compute_dtype)
    b1f = b1.reshape(1, D).astype(jnp.float32)
    b2f = b2.reshape(1, O).astype(jnp.float32)
    if o_pad != O:
        w2c = jnp.pad(w2c, ((0, 0), (0, o_pad - O)))
        b2f = jnp.pad(b2f, ((0, 0), (0, o_pad - O)))

    # Constant-index (resident) weight/bias blocks: single-buffered when the
    # build supports pl.Buffered(1) (saves VMEM; they are only fetched once).
    resident = dict(pipeline_mode=_buffered(1)) if single_buffer_weights else {}

    approx_gate = compute_dtype != jnp.float32
    kernel = functools.partial(classifier_kernel, n_valid_out=O,
                               approx_gate=approx_gate)

    grid = (_cdiv(M, tm),)
    # TODO(synk): if xprof shows exposed DMA at tile boundaries in the bf16
    # path, deepen buffering (pl.Buffered(3)) on the x / output specs only.
    logits2d, logp2d = pl.pallas_call(
        kernel,
        out_shape=(
            jax.ShapeDtypeStruct((M, o_pad), out_dtype),
            jax.ShapeDtypeStruct((M, o_pad), out_dtype),
        ),
        grid_spec=pltpu.PrefetchScalarGridSpec(
            num_scalar_prefetch=0,
            grid=grid,
            in_specs=[
                pl.BlockSpec((tm, D), lambda i: (i, 0)),                 # x rows
                pl.BlockSpec((D, D), lambda i: (0, 0), **resident),      # W1
                pl.BlockSpec((1, D), lambda i: (0, 0), **resident),      # b1
                pl.BlockSpec((D, o_pad), lambda i: (0, 0), **resident),  # W2
                pl.BlockSpec((1, o_pad), lambda i: (0, 0), **resident),  # b2
            ],
            out_specs=[
                pl.BlockSpec((tm, o_pad), lambda i: (i, 0)),   # logits
                pl.BlockSpec((tm, o_pad), lambda i: (i, 0)),   # log-softmax
            ],
        ),
        compiler_params=pltpu.CompilerParams(
            dimension_semantics=("parallel",),
            vmem_limit_bytes=vmem_limit),
    )(x2d, w1c, b1f, w2c, b2f)

    if o_pad != O:
        logits2d = logits2d[:, :O]
        logp2d = logp2d[:, :O]
    return logits2d.reshape(B, S, O), logp2d.reshape(B, S, O)


def classifier_forward(x, w1, b1, w2, b2, *, tm=None,
                       compute_dtype=jnp.bfloat16, out_dtype=None,
                       pad_output_lanes=None):
    """x: [B, S, D]; w1: [D, D] ([in, out]); b1: [1, D]; w2: [D, O]; b2: [1, O].

    Returns (logits, log_softmax(logits)) with shape [B, S, O] in `out_dtype`
    (defaults to `compute_dtype`; bf16 by default for inference).
    """
    B, S, D = x.shape
    O = w2.shape[-1]
    M = B * S

    # Output lane layout: pad O to a multiple of 128 (lane-dense stores) only
    # when the padding overhead is <= 2x; for small O (e.g. edim ~ 16) the 8x
    # HBM write amplification costs more than masked vst in the HBM-bound
    # regime, so the outputs stay unpadded (block last dim == full array dim).
    o_full = _round_up(O, 128)
    if pad_output_lanes is None:
        pad_output_lanes = o_full <= 2 * O
    o_pad = o_full if pad_output_lanes else O

    cdt = jax.dtypes.canonicalize_dtype(compute_dtype)
    odt = jax.dtypes.canonicalize_dtype(out_dtype if out_dtype is not None
                                        else compute_dtype)

    # Per-generation VMEM budget: v5e/v6e have 128 MiB per TC, v7x only 64 MiB
    # (conservative fallback when the query is unavailable).
    vmem_cap = _tpu_vmem_capacity()
    if vmem_cap >= 100 * 2 ** 20:
        budget, limit_cap, tm_cap = 96 * 2 ** 20, 100 * 2 ** 20, 2048
    else:
        budget, limit_cap, tm_cap = 40 * 2 ** 20, 48 * 2 ** 20, 1024

    x_bytes = jnp.dtype(x.dtype).itemsize
    w_bytes = cdt.itemsize
    out_bytes = odt.itemsize
    if tm is None:
        tm = _choose_tm(M, D, o_pad, budget=budget, tm_cap=tm_cap,
                        x_bytes=x_bytes, w_bytes=w_bytes, out_bytes=out_bytes)
    tm = max(_ROW_ALIGN,
             _round_up(min(tm, _round_up(M, _ROW_ALIGN)), _ROW_ALIGN))

    single = _buffered_one_ok()
    need = _vmem_bytes(tm, D, o_pad, 1 if single else 2,
                       x_bytes, w_bytes, out_bytes)
    vmem_limit = int(min(max(2 * need, 16 * 2 ** 20), limit_cap))

    return _forward_impl(x, w1, b1, w2, b2, tm=tm, o_pad=o_pad,
                         compute_dtype=cdt, out_dtype=odt,
                         single_buffer_weights=single, vmem_limit=vmem_limit)


# -----------------------------------------------------------------------------
# Reference / params
# -----------------------------------------------------------------------------
def init_params(key, input_dim, output_dim):
    """PyTorch-Linear-style init; weights returned pre-transposed as [in, out]."""
    k1, k2, k3, k4 = jax.random.split(key, 4)
    bound = 1.0 / jnp.sqrt(input_dim)
    w1 = jax.random.uniform(k1, (input_dim, input_dim), jnp.float32, -bound, bound)
    b1 = jax.random.uniform(k2, (1, input_dim), jnp.float32, -bound, bound)
    w2 = jax.random.uniform(k3, (input_dim, output_dim), jnp.float32, -bound, bound)
    b2 = jax.random.uniform(k4, (1, output_dim), jnp.float32, -bound, bound)
    return w1, b1, w2, b2


def reference_forward(x, w1, b1, w2, b2):
    h = x @ w1 + b1[0]
    h = h * jnp.tanh(jnp.logaddexp(h, 0.0))   # tanh(softplus(h))
    logits = h @ w2 + b2[0]
    return logits, jax.nn.log_softmax(logits, axis=2)


# -----------------------------------------------------------------------------
# Demo / self-check
# -----------------------------------------------------------------------------
if __name__ == "__main__":
    # Small, MXU-aligned stand-in for Classifier(768*2, edim): D=256, O=16.
    B, S, D, O = 2, 8, 256, 16

    key = jax.random.PRNGKey(0)
    kx, kx2, kp = jax.random.split(key, 3)
    x = jax.random.normal(kx, (B, S, D), jnp.float32)
    w1, b1, w2, b2 = init_params(kp, D, O)
    ref_logits, ref_logp = reference_forward(x, w1, b1, w2, b2)

    # f32 path (exact gate division).  Tolerance covers the MXU's default
    # matmul precision for f32 operands.
    logits, logp = classifier_forward(x, w1, b1, w2, b2,
                                      compute_dtype=jnp.float32)
    jax.block_until_ready((logits, logp))
    assert logits.shape == (B, S, O) and logp.shape == (B, S, O)
    assert jnp.allclose(logits, ref_logits, atol=2e-2, rtol=2e-2)
    assert jnp.allclose(logp, ref_logp, atol=2e-2, rtol=2e-2)

    # Default bf16 inference path (bf16 weights + bf16 outputs, approx gate).
    lb, pb = classifier_forward(x, w1, b1, w2, b2)
    jax.block_until_ready((lb, pb))
    assert lb.dtype == jnp.bfloat16 and pb.dtype == jnp.bfloat16
    assert jnp.allclose(lb.astype(jnp.float32), ref_logits, atol=1e-1, rtol=5e-2)
    assert jnp.allclose(pb.astype(jnp.float32), ref_logp, atol=1e-1, rtol=5e-2)

    # Multi-tile path with a non-tile-multiple row count: exercises >1 grid
    # step and the masked (overhanging) last row block -- no wrapper padding.
    B2, S2 = 2, 601
    x2 = jax.random.normal(kx2, (B2, S2, D), jnp.float32)
    ref_logits2, ref_logp2 = reference_forward(x2, w1, b1, w2, b2)
    l2, p2 = classifier_forward(x2, w1, b1, w2, b2, compute_dtype=jnp.float32)
    jax.block_until_ready((l2, p2))
    assert l2.shape == (B2, S2, O)
    assert jnp.allclose(l2, ref_logits2, atol=2e-2, rtol=2e-2)
    assert jnp.allclose(p2, ref_logp2, atol=2e-2, rtol=2e-2)

    print("KERNEL_OK")
</pallas_src>

<mosaic_0001>
module attributes {stable_mosaic.version = 11 : i64} {
  func.func @probe(%arg0: i32, %arg1: memref<8x128xf32, #tpu.memory_space<vmem>>, %arg2: memref<8x128xf32, #tpu.memory_space<vmem>>, %arg3: memref<8x128xf32, #tpu.memory_space<vmem>>) attributes {dimension_semantics = [#tpu.dimension_semantics<arbitrary>], iteration_bounds = array<i64: 2>, scalar_prefetch = 0 : i64, scratch_operands = 0 : i64, tpu.core_type = #tpu.core_type<tc>, window_params = [{transform_indices = @transform_0, window_bounds = array<i64: 8, 128>}, {pipeline_mode = #tpu.pipeline_mode<synchronous>, transform_indices = @transform_1, window_bounds = array<i64: 8, 128>}, {transform_indices = @transform_2, window_bounds = array<i64: 8, 128>}]} {
    %c0 = arith.constant 0 : index
    %c0_0 = arith.constant 0 : index
    %0 = vector.load %arg1[%c0, %c0_0] : memref<8x128xf32, #tpu.memory_space<vmem>>, vector<8x128xf32>
    %c0_1 = arith.constant 0 : index
    %c0_2 = arith.constant 0 : index
    %1 = vector.load %arg2[%c0_1, %c0_2] : memref<8x128xf32, #tpu.memory_space<vmem>>, vector<8x128xf32>
    %2 = arith.addf %0, %1 : vector<8x128xf32>
    %c0_3 = arith.constant 0 : index
    %c0_4 = arith.constant 0 : index
    %3 = vector.load %arg3[%c0_3, %c0_4] : memref<8x128xf32, #tpu.memory_space<vmem>>, vector<8x128xf32>
    tpu.vector_store %arg3[%c0_3, %c0_4], %2 {strides = array<i32>} : memref<8x128xf32, #tpu.memory_space<vmem>>, vector<8x128xf32>,
    return
  }
  func.func @transform_0(%arg0: i32) -> (i32, i32) {
    %c0_i32 = arith.constant 0 : i32
    %c0_i32_0 = arith.constant 0 : i32
    return %arg0, %c0_i32 : i32, i32
  }
  func.func @transform_1(%arg0: i32) -> (i32, i32) {
    %c0_i32 = arith.constant 0 : i32
    %c0_i32_0 = arith.constant 0 : i32
    %c0_i32_1 = arith.constant 0 : i32
    return %c0_i32, %c0_i32_0 : i32, i32
  }
  func.func @transform_2(%arg0: i32) -> (i32, i32) {
    %c0_i32 = arith.constant 0 : i32
    %c0_i32_0 = arith.constant 0 : i32
    return %arg0, %c0_i32 : i32, i32
  }
}

module attributes {stable_mosaic.version = 11 : i64} {
  func.func @classifier_kernel(%arg0: i32, %arg1: memref<16x256xf32, #tpu.memory_space<vmem>>, %arg2: memref<256x256xf32, #tpu.memory_space<vmem>>, %arg3: memref<1x256xf32, #tpu.memory_space<vmem>>, %arg4: memref<256x16xf32, #tpu.memory_space<vmem>>, %arg5: memref<1x16xf32, #tpu.memory_space<vmem>>, %arg6: memref<16x16xf32, #tpu.memory_space<vmem>>, %arg7: memref<16x16xf32, #tpu.memory_space<vmem>>) attributes {dimension_semantics = [#tpu.dimension_semantics<parallel>], iteration_bounds = array<i64: 1>, scalar_prefetch = 0 : i64, scratch_operands = 0 : i64, tpu.core_type = #tpu.core_type<tc>, window_params = [{transform_indices = @transform_0, window_bounds = array<i64: 16, 256>}, {pipeline_mode = #tpu.pipeline_mode<synchronous>, transform_indices = @transform_1, window_bounds = array<i64: 256, 256>}, {pipeline_mode = #tpu.pipeline_mode<synchronous>, transform_indices = @transform_2, window_bounds = array<i64: 1, 256>}, {pipeline_mode = #tpu.pipeline_mode<synchronous>, transform_indices = @transform_3, window_bounds = array<i64: 256, 16>}, {pipeline_mode = #tpu.pipeline_mode<synchronous>, transform_indices = @transform_4, window_bounds = array<i64: 1, 16>}, {transform_indices = @transform_5, window_bounds = array<i64: 16, 16>}, {transform_indices = @transform_6, window_bounds = array<i64: 16, 16>}]} {
    %c0 = arith.constant 0 : index
    %c0_0 = arith.constant 0 : index
    %0 = vector.load %arg1[%c0, %c0_0] : memref<16x256xf32, #tpu.memory_space<vmem>>, vector<16x256xf32>
    %c0_1 = arith.constant 0 : index
    %c0_2 = arith.constant 0 : index
    %1 = vector.load %arg2[%c0_1, %c0_2] : memref<256x256xf32, #tpu.memory_space<vmem>>, vector<256x256xf32>
    %cst = arith.constant dense<0.000000e+00> : vector<16x256xf32>
    %2 = tpu.matmul %0, %1, %cst {dimension_numbers = #tpu.dot_dimension_numbers<[1], [0], [0], [1], [0, 0, 1, 1], [], []>} : vector<16x256xf32>, vector<256x256xf32>, vector<16x256xf32> -> vector<16x256xf32>
    %c0_3 = arith.constant 0 : index
    %c0_4 = arith.constant 0 : index
    %3 = vector.load %arg3[%c0_3, %c0_4] : memref<1x256xf32, #tpu.memory_space<vmem>>, vector<1x256xf32>
    %4 = vector.broadcast %3 : vector<1x256xf32> to vector<16x256xf32>
    %5 = arith.addf %2, %4 : vector<16x256xf32>
    %cst_5 = arith.constant 2.000000e+01 : f32
    %6 = vector.broadcast %cst_5 : f32 to vector<16x256xf32>
    %7 = arith.minimumf %5, %6 : vector<16x256xf32>
    %8 = math.exp %7 : vector<16x256xf32>
    %cst_6 = arith.constant 1.000000e+00 : f32
    %9 = vector.broadcast %cst_6 : f32 to vector<16x256xf32>
    %10 = arith.addf %9, %8 : vector<16x256xf32>
    %cst_7 = arith.constant 1.000000e+00 : f32
    %11 = vector.broadcast %cst_7 : f32 to vector<16x256xf32>
    %12 = arith.addf %11, %8 : vector<16x256xf32>
    %13 = arith.mulf %10, %12 : vector<16x256xf32>
    %cst_8 = arith.constant 1.000000e+00 : f32
    %14 = vector.broadcast %cst_8 : f32 to vector<16x256xf32>
    %15 = arith.subf %13, %14 : vector<16x256xf32>
    %16 = arith.mulf %5, %15 : vector<16x256xf32>
    %cst_9 = arith.constant 1.000000e+00 : f32
    %17 = vector.broadcast %cst_9 : f32 to vector<16x256xf32>
    %18 = arith.addf %13, %17 : vector<16x256xf32>
    %19 = arith.divf %16, %18 : vector<16x256xf32>
    %c0_10 = arith.constant 0 : index
    %c0_11 = arith.constant 0 : index
    %20 = vector.load %arg4[%c0_10, %c0_11] : memref<256x16xf32, #tpu.memory_space<vmem>>, vector<256x16xf32>
    %cst_12 = arith.constant dense<0.000000e+00> : vector<16x16xf32>
    %21 = tpu.matmul %19, %20, %cst_12 {dimension_numbers = #tpu.dot_dimension_numbers<[1], [0], [0], [1], [0, 0, 1, 1], [], []>} : vector<16x256xf32>, vector<256x16xf32>, vector<16x16xf32> -> vector<16x16xf32>
    %c0_13 = arith.constant 0 : index
    %c0_14 = arith.constant 0 : index
    %22 = vector.load %arg5[%c0_13, %c0_14] : memref<1x16xf32, #tpu.memory_space<vmem>>, vector<1x16xf32>
    %23 = vector.broadcast %22 : vector<1x16xf32> to vector<16x16xf32>
    %24 = arith.addf %21, %23 : vector<16x16xf32>
    %c0_15 = arith.constant 0 : index
    %c0_16 = arith.constant 0 : index
    %25 = vector.load %arg6[%c0_15, %c0_16] : memref<16x16xf32, #tpu.memory_space<vmem>>, vector<16x16xf32>
    tpu.vector_store %arg6[%c0_15, %c0_16], %24 {strides = array<i32>} : memref<16x16xf32, #tpu.memory_space<vmem>>, vector<16x16xf32>,
    %cst_17 = arith.constant dense<0xFF800000> : vector<16xf32>
    %26 = vector.multi_reduction <maximumf>, %24, %cst_17 [1] : vector<16x16xf32> to vector<16xf32>
    %27 = vector.shape_cast %26 : vector<16xf32> to vector<16x1xf32>
    %28 = vector.broadcast %27 : vector<16x1xf32> to vector<16x16xf32>
    %29 = arith.subf %24, %28 : vector<16x16xf32>
    %30 = math.exp %29 : vector<16x16xf32>
    %cst_18 = arith.constant dense<0.000000e+00> : vector<16xf32>
    %31 = vector.multi_reduction <add>, %30, %cst_18 [1] : vector<16x16xf32> to vector<16xf32>
    %32 = vector.shape_cast %31 : vector<16xf32> to vector<16x1xf32>
    %33 = math.log %32 : vector<16x1xf32>
    %34 = vector.broadcast %33 : vector<16x1xf32> to vector<16x16xf32>
    %35 = arith.subf %29, %34 : vector<16x16xf32>
    %c0_19 = arith.constant 0 : index
    %c0_20 = arith.constant 0 : index
    %36 = vector.load %arg7[%c0_19, %c0_20] : memref<16x16xf32, #tpu.memory_space<vmem>>, vector<16x16xf32>
    tpu.vector_store %arg7[%c0_19, %c0_20], %35 {strides = array<i32>} : memref<16x16xf32, #tpu.memory_space<vmem>>, vector<16x16xf32>,
    return
  }
  func.func @transform_0(%arg0: i32) -> (i32, i32) {
    %c0_i32 = arith.constant 0 : i32
    %c0_i32_0 = arith.constant 0 : i32
    return %arg0, %c0_i32 : i32, i32
  }
  func.func @transform_1(%arg0: i32) -> (i32, i32) {
    %c0_i32 = arith.constant 0 : i32
    %c0_i32_0 = arith.constant 0 : i32
    %c0_i32_1 = arith.constant 0 : i32
    return %c0_i32, %c0_i32_0 : i32, i32
  }
  func.func @transform_2(%arg0: i32) -> (i32, i32) {
    %c0_i32 = arith.constant 0 : i32
    %c0_i32_0 = arith.constant 0 : i32
    %c0_i32_1 = arith.constant 0 : i32
    return %c0_i32, %c0_i32_0 : i32, i32
  }
  func.func @transform_3(%arg0: i32) -> (i32, i32) {
    %c0_i32 = arith.constant 0 : i32
    %c0_i32_0 = arith.constant 0 : i32
    %c0_i32_1 = arith.constant 0 : i32
    return %c0_i32, %c0_i32_0 : i32, i32
  }
  func.func @transform_4(%arg0: i32) -> (i32, i32) {
    %c0_i32 = arith.constant 0 : i32
    %c0_i32_0 = arith.constant 0 : i32
    %c0_i32_1 = arith.constant 0 : i32
    return %c0_i32, %c0_i32_0 : i32, i32
  }
  func.func @transform_5(%arg0: i32) -> (i32, i32) {
    %c0_i32 = arith.constant 0 : i32
    %c0_i32_0 = arith.constant 0 : i32
    return %arg0, %c0_i32 : i32, i32
  }
  func.func @transform_6(%arg0: i32) -> (i32, i32) {
    %c0_i32 = arith.constant 0 : i32
    %c0_i32_0 = arith.constant 0 : i32
    return %arg0, %c0_i32 : i32, i32
  }
}

</mosaic_0001>

<bundles_post_ra>
// kernel: tpu_custom_call.1
= control target key start
LH: loop header
LB: loop body
LE: loop exit
PB: predicated region body
PF: predicated region fallthrough
CT: control target
= control target key end

     0   :  { %7 = vsyncpa [#allocation3], 0  ;;  %s690_s0 = inlined_call_operand.hbm [shape: f32[16,128], index: 0, kind: input, shape index: {}]   ;;  %s691_s1 = inlined_call_operand.hbm [shape: f32[8,128], index: 1, kind: input, shape index: {}]   ;;  %s692_s2 = inlined_call_operand.hbm [shape: f32[16,128], index: 2, kind: output, shape index: {}]  }
   0x1   :  { %9 = vsyncpa [#allocation3 + $0x1], 0 }
   0x2   :  { %10 = vsyncpa [#allocation6], 0 }
   0x3   :  { %11 = vsyncpa [#allocation4], 0 }
   0x4   :  { %13 = vsyncpa [#allocation4 + $0x1], 0  ;;  %s489_s9 = smov 0   ;;  %s491_s10 = smov 0  }
   0x5   :  { %s493_s11 = smov 0   ;;  %s495_s12 = smov 0  }
   0x6 LB: > { %s510_s13 = sadd.s32 4294967295, %s469_s12   ;;  %s270_s14 = sadd.s32 4294967294, %s469_s12   ;;  %s469_s12 = sphi %s495_s12, %s716_s12   ;;  %s465_s11 = sphi %s493_s11, %s715_s11   ;;  %s461_s10 = sphi %s491_s10, %s714_s10   ;;  %s457_s9 = sphi %s489_s9, %s713_s9  }
   0x7   : > { %p39_p0 = scmp.ne.s32.totalorder %s461_s10, %s457_s9  ;;  %p693_p1 = scmp.eq.s32.totalorder %s510_s13, 0 }
   0x8   : > { %p90_p3 = scmp.eq.s32.totalorder %s270_s14, 1  ;;  %p271_p5 = scmp.ge.s32.totalorder %s469_s12, 1 }
   0x9   : > { %p519_p4 = por %p693_p1, %p39_p0  ;;  %p97_p7 = scmp.lt.s32.totalorder %s469_s12, 3 }
   0xa   : > { %p524_p6 = por %p90_p3, %p39_p0  ;;  %s471_s18 = smov [#allocation5]  }
   0xb   : > { %s696_s15 = scalar_select %p519_p4, 1, 0 }
   0xc   : > { %s697_s16 = scalar_select %p524_p6, 1, 0 }
   0xd   : > { %p529_p8 = pnand %p271_p5, %p97_p7  ;;  %s110_s19 = sshll.u32 %s471_s18, 4  ;;  %s111_s19 = int_to_ptr.vmem [resolvable:$true] %s110_s19 }
   0xe   : > { %s537_s20 = sadd.s32 1, %s469_s12   ;;  %s26_s24 = sadd.s32 1, %s465_s11 }
   0xf   : > { %s698_s17 = scalar_select %p529_p8, 1, 0 }
  0x10   : > { %p292_p10 = pneg %p529_p8  ;;  %s23_s22 = ssub.s32 %s469_s12, %s537_s20 }
  0x11   : > { %p547_p12 = scmp.eq.s32.totalorder %s23_s22, 0  ;;  %s341_s27 = scalar_lea.hbm %s691_s1, 128 }
  0x12   : > { %p541_p11 = pnand %p292_p10, %p693_p1  ;;  %p342_p0 = scmp.ne.s32.totalorder %s691_s1, %s341_s27 }
  0x13   : > { %s700_s23 = scalar_select %p547_p12, 1, 0 }
  0x14   : > { %p343_p3 = pneg %p541_p11  ;;  %p348_p10 = scmp.lt.u32.totalorder %s341_s27, %s691_s1 }
  0x16   : > { %p344_p5 = pnand %p343_p3, %p342_p0 }
  0x18   : > { %p345_p7 = pneg %p344_p5 }
  0x1a   : > { %p350_p9 = pnand %p348_p10, %p345_p7 }
  0x1c   : > { %353 = shalt.err (!%p350_p9)
}
  0x1d   : > { %s354_s4 = scalar_lea.vmem %s111_s19, 128  ;;  %p362_p6 = scmp.lt.s32.totalorder %s111_s19, %s111_s19 }
  0x1e   : > { %p355_p1 = scmp.ne.s32.totalorder %s111_s19, %s354_s4  ;;  %p363_p4 = scmp.lt.s32.totalorder %s354_s4, %s354_s4 }
  0x20   : > { %p357_p2 = pnand %p355_p1, %p343_p3  ;;  %p364_p8 = por %p363_p4, %p362_p6 }
  0x22   : > { %p358_p13 = pneg %p357_p2 }
  0x24   : > { %p365_p12 = pnand %p364_p8, %p358_p13 }
  0x26   : > { %368 = shalt.err (!%p365_p12)
}
  0x27   : > { %295 = dma.hbm_to_vmem [thread:$0]  (!%p541_p11), %s691_s1, 128, %s111_s19, [#allocation6]  }
  0x28   : > { %p701_p1 = scmp.ne.s32.totalorder %s700_s23, 0  ;;  %p34_p2 = scmp.eq.s32.totalorder %s469_s12, 0 }
  0x29   : > { %p702_p4 = scmp.ne.s32.totalorder %s465_s11, %s461_s10  ;;  %p703_p6 = scmp.eq.s32.totalorder %s510_s13, 1 }
  0x2a   : > { %s573_s7 = scalar_select %p701_p1, %s465_s11, %s26_s24  }
  0x2b   : > { %p581_p8 = por %p703_p6, %p702_p4  ;;  %p305_p9 = scmp.lt.s32.totalorder %s469_s12, 2 }
  0x2c   : > { %s121_s14 = sand.u32 1, %s465_s11   ;;  %p705_p12 = pmov %p702_p4 }
  0x2d   : > { %s274_s18 = sshll.u32 %s121_s14, 3  ;;  %s275_s21 = sshll.u32 %s469_s12, 7 }
  0x2e   : > { %p35_p13 = por %p34_p2, %p705_p12  ;;  %s594_s19 = scalar_lea.hbm %s690_s0, %s275_s21 }
  0x2f   : > { %s125_s23 = scalar_lea.vmem [#allocation2], %s274_s18  ;;  %s122_s27 = scalar_lea.sflag [#allocation3], %s121_s14 }
  0x30   : > { %s132_s24 = sshll.u32 %s125_s23, 4  ;;  %p596_p11 = pnand %p305_p9, %p35_p13  ;;  %s600_s24 = int_to_ptr.vmem [resolvable:$true] %s132_s24 }
  0x31   : > { %s369_s28 = scalar_lea.hbm %s594_s19, 128  ;;  %s374_s3 = scalar_lea.hbm %s690_s0, 256 }
  0x32   : > { %p370_p0 = scmp.ne.s32.totalorder %s594_s19, %s369_s28  ;;  %p371_p3 = pneg %p596_p11 }
  0x33   : > { %p375_p10 = scmp.lt.u32.totalorder %s594_s19, %s690_s0  ;;  %p376_p1 = scmp.lt.u32.totalorder %s374_s3, %s369_s28 }
  0x34   : > { %p372_p5 = pnand %p371_p3, %p370_p0  ;;  %p378_p4 = scmp.lt.u32.totalorder %s369_s28, %s594_s19 }
  0x35   : > { %p377_p2 = por %p376_p1, %p375_p10 }
  0x36   : > { %p373_p7 = pneg %p372_p5 }
  0x37   : > { %p379_p6 = por %p378_p4, %p377_p2 }
  0x39   : > { %p380_p9 = pnand %p379_p6, %p373_p7 }
  0x3b   : > { %383 = shalt.err (!%p380_p9)
}
  0x3c   : > { %s384_s6 = scalar_lea.vmem %s600_s24, 128  ;;  %s472_s14 = smov [#allocation2]  }
  0x3d   : > { %p385_p12 = scmp.ne.s32.totalorder %s600_s24, %s384_s6  ;;  %s389_s18 = sshll.u32 %s472_s14, 4  ;;  %s390_s18 = int_to_ptr.vmem [resolvable:$false] %s389_s18 }
  0x3e   : > { %s391_s21 = scalar_lea.vmem %s390_s18, 256  ;;  %p392_p5 = scmp.lt.s32.totalorder %s600_s24, %s390_s18 }
  0x3f   : > { %p387_p13 = pnand %p385_p12, %p371_p3  ;;  %p393_p10 = scmp.lt.s32.totalorder %s391_s21, %s384_s6 }
  0x41   : > { %p388_p0 = pneg %p387_p13  ;;  %p394_p1 = por %p393_p10, %p392_p5 }
  0x43   : > { %p395_p2 = pnand %p394_p1, %p388_p0 }
  0x45   : > { %398 = shalt.err (!%p395_p2)
}
  0x46   : > { %299 = dma.hbm_to_vmem [thread:$0]  (!%p596_p11), %s594_s19, 128, %s600_s24, %s122_s27  }
  0x47   : > { %p707_p7 = scmp.ne.s32.totalorder %s698_s17, 0 }
  0x48   : > { %s630_s22 = sand.u32 (!%p707_p7), 1, %s461_s10   ;;  %p708_p3 = scmp.ne.s32.totalorder (!%p707_p7), %s696_s15, 0 }
  0x49   : > { %141 = sbr.rel (%p707_p7) target bundleno = 109 (0x6d), region = 28  ;;  %s277_s25 = sshll.u32 (!%p707_p7), %s630_s22, 3 }
  0x4a   : > { %s144_s23 = scalar_lea.sflag (!%p707_p7), [#allocation3], %s630_s22  ;;  %s147_s28 = scalar_lea.vmem (!%p707_p7), [#allocation2], %s277_s25 }
  0x50   : > { %444 = dma.done.wait (%p708_p3), %s144_s23, 128  }
  0x51   : > { %446 = vsyncadd (%p708_p3), %s144_s23, 4294967168  ;;  %p709_p4 = scmp.eq.s32.totalorder %s510_s13, 0 }
  0x53   : > { %448 = dma.done.wait (%p709_p4), [#allocation6], 128   ;;  %p710_p11 = pmov %p709_p4 }
  0x54   : > { %s171_s17 = scalar_lea.vmem [#allocation7], %s277_s25  ;;  %s281_s24 = sshll.u32 %s510_s13, 7  ;;  %v172_v0 = vld [vmem:[%s147_s28] sm:$0xff]  ;;  %v173_v1 = vld [vmem:[#allocation5] sm:$0xff] }
  0x55   : > { %450 = vsyncadd (%p710_p11), [#allocation6], 4294967168  ;;  %s190_s19 = sshll.u32 %s171_s17, 4  ;;  %v174_v2 = vadd.f32 %v173_v1, %v172_v0  ;;  %s648_s27 = scalar_lea.hbm %s692_s2, %s281_s24  ;;  %s643_s19 = int_to_ptr.vmem [resolvable:$true] %s190_s19 }
  0x56   : > { %s177_s29 = scalar_lea.sflag [#allocation4], %s630_s22  ;;  %s399_s30 = scalar_lea.vmem %s643_s19, 128 }
  0x57   : > { %175 = vst [vmem:[%s171_s17] sm:$0xff] %v174_v2  ;;  %p400_p6 = scmp.ne.s32.totalorder %s643_s19, %s399_s30  ;;  %s473_s13 = smov [#allocation7]  }
  0x58   : > { %s403_s3 = sshll.u32 %s473_s13, 4  ;;  %s404_s3 = int_to_ptr.vmem [resolvable:$false] %s403_s3 }
  0x59   : > { %p401_p9 = pnand %p400_p6, %p581_p8  ;;  %s405_s4 = scalar_lea.vmem %s404_s3, 256 }
  0x5a   : > { %p406_p13 = scmp.lt.s32.totalorder %s643_s19, %s404_s3  ;;  %p407_p0 = scmp.lt.s32.totalorder %s405_s4, %s399_s30 }
  0x5b   : > { %p402_p12 = pneg %p401_p9 }
  0x5c   : > { %p408_p5 = por %p407_p0, %p406_p13 }
  0x5e   : > { %p409_p10 = pnand %p408_p5, %p402_p12 }
  0x60   : > { %412 = shalt.err (!%p409_p10)
}
  0x61   : > { %s413_s5 = scalar_lea.hbm %s648_s27, 128  ;;  %s417_s18 = scalar_lea.hbm %s692_s2, 256 }
  0x62   : > { %p414_p1 = scmp.ne.s32.totalorder %s648_s27, %s413_s5  ;;  %p418_p3 = scmp.lt.u32.totalorder %s648_s27, %s692_s2 }
  0x63   : > { %p419_p4 = scmp.lt.u32.totalorder %s417_s18, %s413_s5  ;;  %p421_p6 = scmp.lt.u32.totalorder %s413_s5, %s648_s27 }
  0x64   : > { %p415_p2 = pnand %p414_p1, %p581_p8 }
  0x65   : > { %p420_p11 = por %p419_p4, %p418_p3 }
  0x66   : > { %p416_p7 = pneg %p415_p2 }
  0x67   : > { %p422_p9 = por %p421_p6, %p420_p11 }
  0x69   : > { %p423_p12 = pnand %p422_p9, %p416_p7 }
  0x6b   : > { %426 = shalt.err (!%p423_p12)
}
  0x6c   : > { %290 = dma.vmem_to_hbm [thread:$0]  (%p581_p8), %s643_s19, 128, %s648_s27, %s177_s29  }
  0x6d PF: > { %s202_s25 = sand.u32 1, %s457_s9   ;;  %p711_p13 = scmp.ne.s32.totalorder %s697_s16, 0 }
  0x6e   : > { %p712_p0 = scmp.ge.s32.totalorder %s469_s12, 2  ;;  %s203_s23 = scalar_lea.sflag [#allocation4], %s202_s25 }
  0x70   : > { %p301_p5 = pnand %p712_p0, %p711_p13 }
  0x72   : > { %452 = dma.done.wait (!%p301_p5), %s203_s23, 128  }
  0x73   : > { %454 = vsyncadd (!%p301_p5), %s203_s23, 4294967168  ;;  %p16_p10 = scmp.ge.s32.totalorder %s537_s20, 4   ;;  %s713_s9 = smov %s461_s10 }
  0x74   : > { %s714_s10 = smov %s465_s11  ;;  %s715_s11 = smov %s573_s7 }
  0x75   : > { %s716_s12 = smov %s537_s20  ;;  %18 = sbr.rel (!%p16_p10) target bundleno = 6 (0x6), region = 77 }
  0x7c   :  { %208 = vsyncpa [#allocation3], 1 }
  0x7d   :  { %210 = vsyncpa [#allocation3 + $0x1], 1 }
  0x7e   :  { %211 = vsyncpa [#allocation6], 1 }
  0x7f   :  { %212 = vsyncpa [#allocation4], 1 }
  0x80   :  { %214 = vsyncpa [#allocation4 + $0x1], 1 }

// kernel: _forward_impl.1
= control target key start
LH: loop header
LB: loop body
LE: loop exit
PB: predicated region body
PF: predicated region fallthrough
CT: control target
= control target key end

     0   :  { %12 = vsyncpa [#allocation3], 0  ;;  %s859_s0 = inlined_call_operand.vmem [shape: f32[16,256], index: 0, kind: input, shape index: {}]   ;;  %s860_s1 = inlined_call_operand.hbm [shape: f32[256,256], index: 1, kind: input, shape index: {}]   ;;  %s861_s2 = inlined_call_operand.vmem [shape: f32[1,256], index: 2, kind: input, shape index: {}]   ;;  %s862_s3 = inlined_call_operand.vmem [shape: f32[256,16], index: 3, kind: input, shape index: {}]   ;;  %s863_s4 = inlined_call_operand.vmem [shape: f32[1,16], index: 4, kind: input, shape index: {}]   ;;  %s864_s5 = inlined_call_operand.hbm [shape: f32[16,16], index: 5, kind: output, shape index: {0}]   ;;  %s865_s6 = inlined_call_operand.hbm [shape: f32[16,16], index: 6, kind: output, shape index: {1}]  }
   0x1   :  { %13 = vsyncpa [#allocation4], 0 }
   0x2   :  { %14 = vsyncpa [#allocation7], 0  ;;  %s653_s21 = smov [#allocation2]   ;;  %s581_s25 = scalar_lea.hbm %s860_s1, 8192 }
   0x3   :  { %s22_s22 = sshll.u32 %s653_s21, 4  ;;  %p582_p0 = scmp.ne.s32.totalorder %s860_s1, %s581_s25  ;;  %s23_s22 = int_to_ptr.vmem [resolvable:$true] %s22_s22 }
   0x4   :  { %p585_p1 = scmp.lt.u32.totalorder %s581_s25, %s860_s1 }
   0x6   :  { %p587_p2 = pnand %p585_p1, %p582_p0 }
   0x8   :  { %590 = shalt.err (!%p587_p2)
}
   0x9   :  { %s591_s30 = scalar_lea.vmem %s23_s22, 8192  ;;  %p596_p4 = scmp.lt.s32.totalorder %s23_s22, %s23_s22 }
   0xa   :  { %p592_p3 = scmp.ne.s32.totalorder %s23_s22, %s591_s30  ;;  %p597_p5 = scmp.lt.s32.totalorder %s591_s30, %s591_s30 }
   0xc   :  { %p598_p6 = por %p597_p5, %p596_p4 }
   0xe   :  { %p599_p7 = pnand %p598_p6, %p592_p3 }
  0x10   :  { %602 = shalt.err (!%p599_p7)
}
  0x11   :  { %s654_s7 = smov 256   ;;  %s655_s8 = smov 16  }
  0x12   :  { %28 = dma.hbm_to_vmem [thread:$0]  %s860_s1, 8192, %s23_s22, [#allocation3], %s654_s7, %s654_s7, %s655_s8  }
  0x13   :  { %647 = dma.done.wait [#allocation3], 8192  }
  0x14   :  { %648 = vsyncadd [#allocation3], 4294959104  ;;  %v43_v0 = vld [vmem:[#allocation2 + $0x8] sm:$0xff]  ;;  %v45_v1 = vld [vmem:[#allocation2 + $0x18] sm:$0xff]  ;;  %vm349_vm0 = vcmask 130048  }
  0x15   :  { %v42_v2 = vld [vmem:[#allocation2] sm:$0xff]  ;;  %v454_v3 = vpack.c.bf16 %v45_v1, %v43_v0  ;;  %v44_v4 = vld [vmem:[#allocation2 + $0x10] sm:$0xff]  ;;  %v47_v5 = vld [vmem:[#allocation2 + $0x28] sm:$0xff] }
  0x16   :  { %v49_v6 = vld [vmem:[#allocation2 + $0x38] sm:$0xff]  ;;  %v456_v7 = vpack.c.bf16 %v44_v4, %v42_v2  ;;  %v46_v9 = vld [vmem:[#allocation2 + $0x20] sm:$0xff]  ;;  %v48_v10 = vld [vmem:[#allocation2 + $0x30] sm:$0xff] }
  0x17   :  { %v458_v8 = vpack.c.bf16 %v49_v6, %v47_v5  ;;  %v51_v11 = vld [vmem:[#allocation2 + $0x48] sm:$0xff]  ;;  %455 = vmatprep.subr.bf16.mxu0 %v454_v3  ;;  %v53_v12 = vld [vmem:[#allocation2 + $0x58] sm:$0xff]  ;;  %v460_v13 = vpack.c.bf16 %v48_v10, %v46_v9  ;;  %v50_v15 = vld [vmem:[#allocation2 + $0x40] sm:$0xff] }
  0x18   :  { %457 = vmatpush1.bf16.msra.mxu0 %v456_v7  ;;  %v462_v14 = vpack.c.bf16 %v53_v12, %v51_v11  ;;  %v52_v16 = vld [vmem:[#allocation2 + $0x50] sm:$0xff]  ;;  %v55_v17 = vld [vmem:[#allocation2 + $0x68] sm:$0xff]  ;;  %v57_v18 = vld [vmem:[#allocation2 + $0x78] sm:$0xff] }
  0x19   :  { %459 = vmatprep.subr.bf16.mxu0 %v458_v8  ;;  %v464_v19 = vpack.c.bf16 %v52_v16, %v50_v15  ;;  %v466_v20 = vpack.c.bf16 %v57_v18, %v55_v17  ;;  %v54_v21 = vld [vmem:[#allocation2 + $0x60] sm:$0xff]  ;;  %v56_v22 = vld [vmem:[#allocation2 + $0x70] sm:$0xff]  ;;  %v59_v23 = vld [vmem:[#allocation2 + $0x88] sm:$0xff] }
  0x1a   :  { %v61_v24 = vld [vmem:[#allocation2 + $0x98] sm:$0xff]  ;;  %v468_v25 = vpack.c.bf16 %v56_v22, %v54_v21  ;;  %v58_v27 = vld [vmem:[#allocation2 + $0x80] sm:$0xff]  ;;  %v60_v28 = vld [vmem:[#allocation2 + $0x90] sm:$0xff] }
  0x1b   :  { %v470_v26 = vpack.c.bf16 %v61_v24, %v59_v23  ;;  %v63_v29 = vld [vmem:[#allocation2 + $0xa8] sm:$0xff]  ;;  %v65_v30 = vld [vmem:[#allocation2 + $0xb8] sm:$0xff]  ;;  %v472_v31 = vpack.c.bf16 %v60_v28, %v58_v27  ;;  %v62_v33 = vld [vmem:[#allocation2 + $0xa0] sm:$0xff] }
  0x1c   :  { %461 = vmatpush1.bf16.msra.mxu0 %v460_v13  ;;  %v474_v32 = vpack.c.bf16 %v65_v30, %v63_v29  ;;  %v64_v34 = vld [vmem:[#allocation2 + $0xb0] sm:$0xff]  ;;  %v67_v35 = vld [vmem:[#allocation2 + $0xc8] sm:$0xff]  ;;  %v69_v36 = vld [vmem:[#allocation2 + $0xd8] sm:$0xff] }
  0x1d   :  { %463 = vmatprep.subr.bf16.mxu0 %v462_v14  ;;  %v476_v37 = vpack.c.bf16 %v64_v34, %v62_v33  ;;  %v478_v38 = vpack.c.bf16 %v69_v36, %v67_v35  ;;  %v66_v39 = vld [vmem:[#allocation2 + $0xc0] sm:$0xff]  ;;  %v68_v40 = vld [vmem:[#allocation2 + $0xd0] sm:$0xff]  ;;  %v39_v41 = vld [vmem:[%s859_s0 + $0x8] sm:$0xff] }
  0x1e   :  { %v71_v42 = vld [vmem:[#allocation2 + $0xe8] sm:$0xff]  ;;  %v73_v43 = vld [vmem:[#allocation2 + $0xf8] sm:$0xff]  ;;  %182 = vmatprep.mubr.f32.mxu0 %v39_v41  ;;  %v480_v44 = vpack.c.bf16 %v68_v40, %v66_v39  ;;  %v70_v46 = vld [vmem:[#allocation2 + $0xe0] sm:$0xff] }
  0x1f   :  { %v482_v45 = vpack.c.bf16 %v73_v43, %v71_v42  ;;  %v72_v47 = vld [vmem:[#allocation2 + $0xf0] sm:$0xff]  ;;  %v75_v48 = vld [vmem:[#allocation2 + $0x108] sm:$0xff]  ;;  %v77_v49 = vld [vmem:[#allocation2 + $0x118] sm:$0xff] }
  0x20   :  { %465 = vmatpush1.bf16.msra.mxu0 %v464_v19  ;;  %v484_v50 = vpack.c.bf16 %v72_v47, %v70_v46  ;;  %v486_v51 = vpack.c.bf16 %v77_v49, %v75_v48  ;;  %v74_v52 = vld [vmem:[#allocation2 + $0x100] sm:$0xff]  ;;  %v76_v53 = vld [vmem:[#allocation2 + $0x110] sm:$0xff]  ;;  %v79_v54 = vld [vmem:[#allocation2 + $0x128] sm:$0xff] }
  0x21   :  { %467 = vmatprep.subr.bf16.mxu0 %v466_v20  ;;  %v81_v55 = vld [vmem:[#allocation2 + $0x138] sm:$0xff]  ;;  %v488_v56 = vpack.c.bf16 %v76_v53, %v74_v52  ;;  %v78_v58 = vld [vmem:[#allocation2 + $0x120] sm:$0xff]  ;;  %v80_v59 = vld [vmem:[#allocation2 + $0x130] sm:$0xff] }
  0x22   :  { %v490_v57 = vpack.c.bf16 %v81_v55, %v79_v54  ;;  %v83_v60 = vld [vmem:[#allocation2 + $0x148] sm:$0xff]  ;;  %v85_v61 = vld [vmem:[#allocation2 + $0x158] sm:$0xff]  ;;  %v492_v62 = vpack.c.bf16 %v80_v59, %v78_v58  ;;  %v82_v0 = vld [vmem:[#allocation2 + $0x140] sm:$0xff] }
  0x23   :  { %v494_v63 = vpack.c.bf16 %v85_v61, %v83_v60  ;;  %v84_v1 = vld [vmem:[#allocation2 + $0x150] sm:$0xff]  ;;  %v87_v2 = vld [vmem:[#allocation2 + $0x168] sm:$0xff]  ;;  %v89_v3 = vld [vmem:[#allocation2 + $0x178] sm:$0xff] }
  0x24   :  { %469 = vmatpush1.bf16.msra.mxu0 %v468_v25  ;;  %v496_v4 = vpack.c.bf16 %v84_v1, %v82_v0  ;;  %v498_v5 = vpack.c.bf16 %v89_v3, %v87_v2  ;;  %v86_v6 = vld [vmem:[#allocation2 + $0x160] sm:$0xff]  ;;  %v88_v7 = vld [vmem:[#allocation2 + $0x170] sm:$0xff]  ;;  %v91_v8 = vld [vmem:[#allocation2 + $0x188] sm:$0xff] }
  0x25   :  { %471 = vmatprep.subr.bf16.mxu0 %v470_v26  ;;  %v93_v9 = vld [vmem:[#allocation2 + $0x198] sm:$0xff]  ;;  %v500_v10 = vpack.c.bf16 %v88_v7, %v86_v6  ;;  %v90_v12 = vld [vmem:[#allocation2 + $0x180] sm:$0xff]  ;;  %v92_v13 = vld [vmem:[#allocation2 + $0x190] sm:$0xff] }
  0x26   :  { %v502_v11 = vpack.c.bf16 %v93_v9, %v91_v8  ;;  %v95_v14 = vld [vmem:[#allocation2 + $0x1a8] sm:$0xff]  ;;  %v97_v15 = vld [vmem:[#allocation2 + $0x1b8] sm:$0xff]  ;;  %v504_v16 = vpack.c.bf16 %v92_v13, %v90_v12  ;;  %v94_v18 = vld [vmem:[#allocation2 + $0x1a0] sm:$0xff] }
  0x27   :  { %v506_v17 = vpack.c.bf16 %v97_v15, %v95_v14  ;;  %v96_v19 = vld [vmem:[#allocation2 + $0x1b0] sm:$0xff]  ;;  %v99_v20 = vld [vmem:[#allocation2 + $0x1c8] sm:$0xff]  ;;  %v101_v21 = vld [vmem:[#allocation2 + $0x1d8] sm:$0xff] }
  0x28   :  { %473 = vmatpush1.bf16.msra.mxu0 %v472_v31  ;;  %v508_v22 = vpack.c.bf16 %v96_v19, %v94_v18  ;;  %v510_v23 = vpack.c.bf16 %v101_v21, %v99_v20  ;;  %v98_v24 = vld [vmem:[#allocation2 + $0x1c0] sm:$0xff]  ;;  %v100_v25 = vld [vmem:[#allocation2 + $0x1d0] sm:$0xff]  ;;  %v103_v26 = vld [vmem:[#allocation2 + $0x1e8] sm:$0xff]  ;;  %v108_v20 = vlaneseq }
  0x29   :  { %475 = vmatprep.subr.bf16.mxu0 %v474_v32  ;;  %v105_v27 = vld [vmem:[#allocation2 + $0x1f8] sm:$0xff]  ;;  %v512_v28 = vpack.c.bf16 %v100_v25, %v98_v24  ;;  %v102_v30 = vld [vmem:[#allocation2 + $0x1e0] sm:$0xff]  ;;  %v104_v31 = vld [vmem:[#allocation2 + $0x1f0] sm:$0xff] }
  0x2a   :  { %v514_v29 = vpack.c.bf16 %v105_v27, %v103_v26  ;;  %v516_v32 = vpack.c.bf16 %v104_v31, %v102_v30  ;;  %v38_v33 = vld [vmem:[%s859_s0] sm:$0xff]  ;;  %v41_v34 = vld [vmem:[%s859_s0 + $0x18] sm:$0xff]  ;;  %v40_v35 = vld [vmem:[%s859_s0 + $0x10] sm:$0xff]  ;;  %v109_v21 = vshrl.u32 %v108_v20, 7 }
  0x2b   :  { %v251_v36 = vld [vmem:[%s862_s3 + $0x80] sm:$0xff]  ;;  %v236_v40 = vld [vmem:[%s862_s3 + $0x8] sm:$0xff]  ;;  %v253_v42 = vld [vmem:[%s862_s3 + $0x90] sm:$0xff] }
  0x2c   :  { %477 = vmatpush1.bf16.msra.mxu0 %v476_v37  ;;  %v252_v37 = vld [vmem:[%s862_s3 + $0x88] sm:$0xff]  ;;  %v235_v39 = vld [vmem:[%s862_s3] sm:$0xff]  ;;  %v254_v43 = vld [vmem:[%s862_s3 + $0x98] sm:$0xff]  ;;  %v114_v24 = vsub.s32 1, %v109_v21 }
  0x2d   :  { %479 = vmatprep.subr.bf16.mxu0 %v478_v38  ;;  %v518_v38 = vpack.c.bf16 %v252_v37, %v251_v36  ;;  %v520_v41 = vpack.c.bf16 %v236_v40, %v235_v39  ;;  %v238_v46 = vld [vmem:[%s862_s3 + $0x18] sm:$0xff]  ;;  %v255_v48 = vld [vmem:[%s862_s3 + $0xa0] sm:$0xff]  ;;  %v256_v49 = vld [vmem:[%s862_s3 + $0xa8] sm:$0xff] }
  0x2e   :  { %v240_v52 = vld [vmem:[%s862_s3 + $0x28] sm:$0xff]  ;;  %v257_v54 = vld [vmem:[%s862_s3 + $0xb0] sm:$0xff]  ;;  %v258_v55 = vld [vmem:[%s862_s3 + $0xb8] sm:$0xff] }
  0x2f   :  { %519 = vmatprep.subr.bf16.mxu1 %v518_v38  ;;  %v242_v58 = vld [vmem:[%s862_s3 + $0x38] sm:$0xff]  ;;  %v259_v60 = vld [vmem:[%s862_s3 + $0xc0] sm:$0xff]  ;;  %v260_v61 = vld [vmem:[%s862_s3 + $0xc8] sm:$0xff] }
  0x30   :  { %481 = vmatpush1.bf16.msra.mxu0 %v480_v44  ;;  %521 = vmatpush3.bf16.msra.mxu1 %v520_v41  ;;  %v522_v44 = vpack.c.bf16 %v254_v43, %v253_v42  ;;  %v244_v0 = vld [vmem:[%s862_s3 + $0x48] sm:$0xff]  ;;  %v261_v2 = vld [vmem:[%s862_s3 + $0xd0] sm:$0xff]  ;;  %v262_v3 = vld [vmem:[%s862_s3 + $0xd8] sm:$0xff] }
  0x31   :  { %483 = vmatprep.subr.bf16.mxu0 %v482_v45  ;;  %v237_v45 = vld [vmem:[%s862_s3 + $0x10] sm:$0xff]  ;;  %v246_v6 = vld [vmem:[%s862_s3 + $0x58] sm:$0xff]  ;;  %v263_v8 = vld [vmem:[%s862_s3 + $0xe0] sm:$0xff] }
  0x32   :  { %v524_v47 = vpack.c.bf16 %v238_v46, %v237_v45  ;;  %523 = vmatprep.subr.bf16.mxu1 %v522_v44  ;;  %v264_v9 = vld [vmem:[%s862_s3 + $0xe8] sm:$0xff]  ;;  %v265_v13 = vld [vmem:[%s862_s3 + $0xf0] sm:$0xff]  ;;  %v266_v15 = vld [vmem:[%s862_s3 + $0xf8] sm:$0xff] }
  0x33   :  { %v248_v12 = vld [vmem:[%s862_s3 + $0x68] sm:$0xff]  ;;  %v546_v18 = vpack.c.bf16 %v266_v15, %v265_v13 }
  0x34   :  { %485 = vmatpush1.bf16.msra.mxu0 %v484_v50  ;;  %525 = vmatpush3.bf16.msra.mxu1 %v524_v47  ;;  %v526_v50 = vpack.c.bf16 %v256_v49, %v255_v48 }
  0x35   :  { %487 = vmatprep.subr.bf16.mxu0 %v486_v51  ;;  %v239_v51 = vld [vmem:[%s862_s3 + $0x20] sm:$0xff] }
  0x36   :  { %v528_v53 = vpack.c.bf16 %v240_v52, %v239_v51  ;;  %527 = vmatprep.subr.bf16.mxu1 %v526_v50 }
  0x38   :  { %489 = vmatpush1.bf16.msra.mxu0 %v488_v56  ;;  %529 = vmatpush3.bf16.msra.mxu1 %v528_v53  ;;  %v530_v56 = vpack.c.bf16 %v258_v55, %v257_v54 }
  0x39   :  { %491 = vmatprep.subr.bf16.mxu0 %v490_v57  ;;  %v241_v57 = vld [vmem:[%s862_s3 + $0x30] sm:$0xff] }
  0x3a   :  { %v532_v59 = vpack.c.bf16 %v242_v58, %v241_v57  ;;  %531 = vmatprep.subr.bf16.mxu1 %v530_v56 }
  0x3c   :  { %493 = vmatpush1.bf16.msra.mxu0 %v492_v62  ;;  %533 = vmatpush3.bf16.msra.mxu1 %v532_v59  ;;  %v534_v62 = vpack.c.bf16 %v260_v61, %v259_v60 }
  0x3d   :  { %495 = vmatprep.subr.bf16.mxu0 %v494_v63  ;;  %v243_v63 = vld [vmem:[%s862_s3 + $0x40] sm:$0xff] }
  0x3e   :  { %v536_v1 = vpack.c.bf16 %v244_v0, %v243_v63  ;;  %535 = vmatprep.subr.bf16.mxu1 %v534_v62 }
  0x40   :  { %497 = vmatpush1.bf16.msra.mxu0 %v496_v4  ;;  %537 = vmatpush3.bf16.msra.mxu1 %v536_v1  ;;  %v538_v4 = vpack.c.bf16 %v262_v3, %v261_v2 }
  0x41   :  { %499 = vmatprep.subr.bf16.mxu0 %v498_v5  ;;  %v245_v5 = vld [vmem:[%s862_s3 + $0x50] sm:$0xff] }
  0x42   :  { %v540_v7 = vpack.c.bf16 %v246_v6, %v245_v5  ;;  %539 = vmatprep.subr.bf16.mxu1 %v538_v4 }
  0x44   :  { %501 = vmatpush1.bf16.msra.mxu0 %v500_v10  ;;  %541 = vmatpush3.bf16.msra.mxu1 %v540_v7  ;;  %v542_v10 = vpack.c.bf16 %v264_v9, %v263_v8 }
  0x45   :  { %503 = vmatprep.subr.bf16.mxu0 %v502_v11  ;;  %v247_v11 = vld [vmem:[%s862_s3 + $0x60] sm:$0xff] }
  0x46   :  { %v544_v14 = vpack.c.bf16 %v248_v12, %v247_v11  ;;  %543 = vmatprep.subr.bf16.mxu1 %v542_v10  ;;  %v415_v12 = vld [vmem:[%s863_s4] ss:$0 sm:$0xff]  ;;  %s656_s4 = smov [#allocation5]  }
  0x47   :  { %s383_s7 = sshll.u32 %s656_s4, 4  ;;  %s384_s7 = int_to_ptr.vmem [resolvable:$true] %s383_s7 }
  0x48   :  { %505 = vmatpush1.bf16.msra.mxu0 %v504_v16  ;;  %v249_v16 = vld [vmem:[%s862_s3 + $0x70] sm:$0xff]  ;;  %545 = vmatpush3.bf16.msra.mxu1 %v544_v14  ;;  %s603_s8 = scalar_lea.vmem %s384_s7, 256  ;;  %p608_p9 = scmp.lt.s32.totalorder %s384_s7, %s384_s7 }
  0x49   :  { %507 = vmatprep.subr.bf16.mxu0 %v506_v17  ;;  %v250_v17 = vld [vmem:[%s862_s3 + $0x78] sm:$0xff]  ;;  %547 = vmatprep.subr.bf16.mxu1 %v546_v18  ;;  %p604_p8 = scmp.ne.s32.totalorder %s384_s7, %s603_s8  ;;  %p609_p10 = scmp.lt.s32.totalorder %s603_s8, %s603_s8 }
  0x4a   :  { %v548_v19 = vpack.c.bf16 %v250_v17, %v249_v16 }
  0x4b   :  { %p610_p11 = por %p609_p10, %p608_p9 }
  0x4c   :  { %509 = vmatpush1.bf16.msra.mxu0 %v508_v22  ;;  %549 = vmatpush3.bf16.msra.mxu1 %v548_v19  ;;  %v110_v22 = vsub.s32 0, %v109_v21 }
  0x4d   :  { %511 = vmatprep.subr.bf16.mxu0 %v510_v23  ;;  %v106_v23 = vld [vmem:[%s861_s2] sm:$0x3]  ;;  %p611_p12 = pnand %p610_p11, %p604_p8 }
  0x4e   :  { %v111_v25 = vrot.slane %v106_v23, %v110_v22  ;;  %v115_v26 = vrot.slane %v106_v23, %v114_v24 }
  0x50   :  { %513 = vmatpush1.bf16.msra.mxu0 %v512_v28 }
  0x51   :  { %515 = vmatprep.subr.bf16.mxu0 %v514_v29 }
  0x54   :  { %517 = vmatpush1.bf16.msra.mxu0 %v516_v32 }
  0x57   :  { %183 = vmatmul.mubr.f32.vlgmr.msra.gmra.mrb[0].mxu0 %v38_v33 }
  0x58   :  { %188 = vmatprep.mubr.f32.mxu0 %v41_v34 }
  0x5b   :  { %189 = vmatmul.mubr.f32.gmra.mrb[2].mxu0 %v40_v35 }
 0x12a   :  { %v184_v27 = vpop.f32.mrb[0].mxu0 }
 0x12b   :  { %v185_v28 = vadd.f32 %v184_v27, %v111_v25  ;;  %v186_v29 = vpop.f32.mrb[1].mxu0 }
 0x12c   :  { %v187_v30 = vadd.f32 %v186_v29, %v115_v26 }
 0x12d   :  { %v195_v31 = vmin.f32 %v185_v28, 20.0 }
 0x12e   :  { %v196_v32 = vmin.f32 %v187_v30, 20.0  ;;  %v190_v33 = vpop.f32.mrb[2].mxu0 }
 0x12f   :  { %v199_v34 = vmul.f32 1.442695, %v195_v31  ;;  %v191_v35 = vadd.f32 %v190_v33, %v111_v25  ;;  %v192_v36 = vpop.f32.mrb[3].mxu0 }
 0x130   :  { %v201_v37 = vmul.f32 1.442695, %v196_v32  ;;  %v193_v38 = vadd.f32 %v192_v36, %v115_v26 }
 0x131   :  { %557 = vpow2.f32 %v199_v34  ;;  %v197_v39 = vmin.f32 %v191_v35, 20.0 }
 0x132   :  { %559 = vpow2.f32 %v201_v37  ;;  %v198_v40 = vmin.f32 %v193_v38, 20.0 }
 0x133   :  { %v203_v41 = vmul.f32 1.442695, %v197_v39 }
 0x134   :  { %v205_v42 = vmul.f32 1.442695, %v198_v40 }
 0x135   :  { %561 = vpow2.f32 %v203_v41 }
 0x136   :  { %563 = vpow2.f32 %v205_v42 }
 0x13b   :  { %v558_v43 = vpop.eup %557 }
 0x13c   :  { %v560_v44 = vpop.eup %559  ;;  %v207_v45 = vadd.f32 1.0, %v558_v43 }
 0x13d   :  { %v208_v46 = vadd.f32 1.0, %v560_v44 }
 0x13e   :  { %v211_v47 = vmul.f32 %v207_v45, %v207_v45 }
 0x13f   :  { %v562_v48 = vpop.eup %561  ;;  %v212_v49 = vmul.f32 %v208_v46, %v208_v46 }
 0x140   :  { %v564_v50 = vpop.eup %563  ;;  %v223_v51 = vadd.f32 1.0, %v211_v47  ;;  %v209_v52 = vadd.f32 1.0, %v562_v48  ;;  %v411_v60 = vadd.f32 -1.0, %v211_v47 }
 0x141   :  { %v210_v53 = vadd.f32 1.0, %v564_v50  ;;  %v224_v54 = vadd.f32 1.0, %v212_v49  ;;  %v412_v59 = vadd.f32 -1.0, %v212_v49 }
 0x142   :  { %565 = vrcp.f32 %v223_v51  ;;  %v213_v55 = vmul.f32 %v209_v52, %v209_v52  ;;  %v219_v1 = vmul.f32 %v411_v60, %v185_v28 }
 0x143   :  { %v214_v56 = vmul.f32 %v210_v53, %v210_v53  ;;  %567 = vrcp.f32 %v224_v54  ;;  %v220_v63 = vmul.f32 %v412_v59, %v187_v30 }
 0x144   :  { %v225_v57 = vadd.f32 1.0, %v213_v55  ;;  %v413_v2 = vadd.f32 -1.0, %v213_v55 }
 0x145   :  { %v226_v58 = vadd.f32 1.0, %v214_v56  ;;  %v414_v62 = vadd.f32 -1.0, %v214_v56 }
 0x146   :  { %569 = vrcp.f32 %v225_v57  ;;  %v221_v8 = vmul.f32 %v413_v2, %v191_v35 }
 0x147   :  { %571 = vrcp.f32 %v226_v58  ;;  %v222_v6 = vmul.f32 %v414_v62, %v193_v38 }
 0x14c   :  { %v566_v61 = vpop.eup %565 }
 0x14d   :  { %v568_v0 = vpop.eup %567  ;;  %v228_v4 = vmul.f32 %v566_v61, %v219_v1 }
 0x14e   :  { %v230_v3 = vmul.f32 %v568_v0, %v220_v63 }
 0x150   :  { %v570_v5 = vpop.eup %569  ;;  %338 = vmatprep.mubr.f32.mxu1 %v230_v3 }
 0x151   :  { %v572_v7 = vpop.eup %571  ;;  %339 = vmatmul.mubr.f32.vlgmr.msra.gmra.mrb[0].mxu1 %v228_v4  ;;  %v232_v10 = vmul.f32 %v570_v5, %v221_v8 }
 0x152   :  { %v234_v9 = vmul.f32 %v572_v7, %v222_v6 }
 0x154   :  { %343 = vmatprep.mubr.f32.mxu1 %v234_v9 }
 0x155   :  { %344 = vmatmul.mubr.f32.gmra.mrb[2].mxu1 %v232_v10 }
 0x224   :  { %v448_v11 = vpop.f32.mrb[0].mxu1 }
 0x225   :  { %v449_v13 = vpop.f32.mrb[1].mxu1 }
 0x226   :  { %v450_v14 = vadd.f32 %v449_v13, %v448_v11 }
 0x228   :  { %v341_v15 = vadd.f32 %v450_v14, %v415_v12  ;;  %v451_v16 = vpop.f32.mrb[2].mxu1 }
 0x229   :  { %v452_v17 = vpop.f32.mrb[3].mxu1 }
 0x22a   :  { %350 = vst.msk [vmem:[#allocation5] sm:$0xff] %vm349_vm0, %v341_v15  ;;  %v453_v18 = vadd.f32 %v452_v17, %v451_v16  ;;  %v352_v19 = vsel %vm349_vm0, %v341_v15, -inf }
 0x22b   :  { %353 = vmax.xlane.f32.xlu0 %v352_v19 }
 0x22c   :  { %v346_v20 = vadd.f32 %v453_v18, %v415_v12 }
 0x22e   :  { %351 = vst.msk [vmem:[#allocation5 + $0x8] sm:$0xff] %vm349_vm0, %v346_v20  ;;  %v355_v21 = vsel %vm349_vm0, %v346_v20, -inf }
 0x22f   :  { %356 = vmax.xlane.f32.xlu0 %v355_v21 }
 0x2b8   :  { %v354_v22 = vpop.xlane.xlu0 %353 }
 0x2b9   :  { %v358_v23 = vsub.f32 %v341_v15, %v354_v22 }
 0x2bb   :  { %v360_v24 = vmul.f32 1.442695, %v358_v23 }
 0x2bc   :  { %v357_v25 = vpop.xlane.xlu0 %356 }
 0x2bd   :  { %573 = vpow2.f32 %v360_v24  ;;  %v359_v26 = vsub.f32 %v346_v20, %v357_v25 }
 0x2bf   :  { %v362_v27 = vmul.f32 1.442695, %v359_v26 }
 0x2c1   :  { %575 = vpow2.f32 %v362_v27 }
 0x2c7   :  { %v574_v28 = vpop.eup %573 }
 0x2c8   :  { %v364_v29 = vsel %vm349_vm0, %v574_v28, 0.0 }
 0x2c9   :  { %365 = vadd.xlane.f32.xlu1 %v364_v29 }
 0x2cb   :  { %v576_v30 = vpop.eup %575 }
 0x2cc   :  { %v367_v31 = vsel %vm349_vm0, %v576_v30, 0.0 }
 0x2cd   :  { %368 = vadd.xlane.f32.xlu1 %v367_v31 }
 0x2ce   :  { %614 = shalt.err (!%p611_p12)
}
 0x2cf   :  { %s615_s1 = scalar_lea.hbm %s864_s5, 256 }
 0x2d0   :  { %p616_p13 = scmp.ne.s32.totalorder %s864_s5, %s615_s1  ;;  %p619_p0 = scmp.lt.u32.totalorder %s615_s1, %s864_s5 }
 0x2d2   :  { %p621_p1 = pnand %p619_p0, %p616_p13 }
 0x2d4   :  { %624 = shalt.err (!%p621_p1)
}
 0x2d5   :  { %s657_s15 = smov 128   ;;  %s658_s16 = smov 8  }
 0x2d6   :  { %389 = dma.vmem_to_hbm [thread:$0]  %s384_s7, 256, %s864_s5, [#allocation4], %s657_s15, %s657_s15, %s658_s16  }
 0x2d7   :  { %s659_s19 = smov [#allocation6]  }
 0x2d8   :  { %s395_s20 = sshll.u32 %s659_s19, 4  ;;  %s396_s20 = int_to_ptr.vmem [resolvable:$true] %s395_s20 }
 0x2d9   :  { %s625_s21 = scalar_lea.vmem %s396_s20, 256  ;;  %p630_p3 = scmp.lt.s32.totalorder %s396_s20, %s396_s20 }
 0x2da   :  { %p626_p2 = scmp.ne.s32.totalorder %s396_s20, %s625_s21  ;;  %p631_p4 = scmp.lt.s32.totalorder %s625_s21, %s625_s21 }
 0x2dc   :  { %p632_p5 = por %p631_p4, %p630_p3 }
 0x2de   :  { %p633_p6 = pnand %p632_p5, %p626_p2 }
 0x356   :  { %v366_v32 = vpop.xlane.xlu1 %365 }
 0x357   :  { %577 = vlog2.f32 %v366_v32 }
 0x35a   :  { %v369_v33 = vpop.xlane.xlu1 %368 }
 0x35b   :  { %579 = vlog2.f32 %v369_v33 }
 0x361   :  { %v578_v34 = vpop.eup %577 }
 0x362   :  { %v371_v35 = vmul.f32 0.6931472, %v578_v34 }
 0x364   :  { %v374_v36 = vsub.f32 %v358_v23, %v371_v35 }
 0x365   :  { %v580_v37 = vpop.eup %579 }
 0x366   :  { %376 = vst.msk [vmem:[#allocation6] sm:$0xff] %vm349_vm0, %v374_v36  ;;  %v373_v38 = vmul.f32 0.6931472, %v580_v37 }
 0x368   :  { %v375_v39 = vsub.f32 %v359_v26, %v373_v38 }
 0x36a   :  { %377 = vst.msk [vmem:[#allocation6 + $0x8] sm:$0xff] %vm349_vm0, %v375_v39 }
 0x36b   :  { %636 = shalt.err (!%p633_p6)
}
 0x36c   :  { %s637_s23 = scalar_lea.hbm %s865_s6, 256 }
 0x36d   :  { %p638_p7 = scmp.ne.s32.totalorder %s865_s6, %s637_s23  ;;  %p641_p8 = scmp.lt.u32.totalorder %s637_s23, %s865_s6 }
 0x36f   :  { %p643_p9 = pnand %p641_p8, %p638_p7 }
 0x371   :  { %646 = shalt.err (!%p643_p9)
}
 0x372   :  { %401 = dma.vmem_to_hbm [thread:$0]  %s396_s20, 256, %s865_s6, [#allocation7], %s657_s15, %s657_s15, %s658_s16  }
 0x373   :  { %649 = dma.done.wait [#allocation4], 256  }
 0x374   :  { %650 = vsyncadd [#allocation4], 4294967040 }
 0x375   :  { %651 = dma.done.wait [#allocation7], 256  }
 0x376   :  { %652 = vsyncadd [#allocation7], 4294967040 }
 0x377   :  { %408 = vsyncpa [#allocation3], 1 }
 0x378   :  { %409 = vsyncpa [#allocation4], 1 }
 0x379   :  { %410 = vsyncpa [#allocation7], 1 }

</bundles_post_ra>
